<compile_context>
chip_gen: v5e
topology: v5e:2x2
jax: 0.10.0
libtpu: 0.0.40
codegen_flags: <defaults>
</compile_context>

<pallas_src>
import functools

import jax
import jax.numpy as jnp
from jax.experimental import pallas as pl
from jax.experimental.pallas import tpu as pltpu


# ----------------------------------------------------------------------------
# Fused MLP kernel: chains all Linear(+ReLU) layers on-chip.
# ----------------------------------------------------------------------------
def _fused_mlp_kernel(*refs, num_layers: int):
    # refs = (x_ref, w1, b1, w2, b2, ..., wL, bL, o_ref)
    x_ref = refs[0]
    o_ref = refs[-1]
    # NOTE: when M % tm != 0 the padded rows of the last x block hold
    # uninitialized VMEM; they get computed but are masked on writeback, so
    # results are correct (only relevant if NaN-trapping debug modes are on).
    h = x_ref[...].astype(jnp.float32)
    for i in range(num_layers):
        w = refs[1 + 2 * i][...]
        b = refs[2 + 2 * i][...].astype(jnp.float32)   # (1, N) -> row broadcast
        if w.dtype == jnp.float32:
            # Full-fp32 MXU passes: matches a true f32 PyTorch reference.
            acc = jnp.dot(h, w, preferred_element_type=jnp.float32,
                          precision=jax.lax.Precision.HIGHEST)
        else:
            # bf16 operands, f32 accumulation (native MXU rate on v6e/v7x,
            # half the weight traffic).  Bias-add / ReLU stay f32.
            acc = jnp.dot(h.astype(w.dtype), w,
                          preferred_element_type=jnp.float32)
        h = acc + b
        if i < num_layers - 1:            # no activation on the final layer
            h = jnp.maximum(h, 0.0)
    o_ref[...] = h.astype(o_ref.dtype)


def fused_mlp_pallas(x, params):
    """Runs the whole Linear/ReLU stack as a single Pallas kernel.

    x      : (M, K0) activations.
    params : list of (w, b) with w: (K_i, N_i) [pre-transposed], b: (1, N_i).
    """
    M, K0 = x.shape
    num_layers = len(params)
    n_out = params[-1][0].shape[1]
    max_width = max([K0] + [w.shape[1] for (w, _) in params])
    itemsize = x.dtype.itemsize

    # ---- batch-tile selection: VMEM-budget based, not a hard-coded 256 ----
    # Per-row VMEM use: double-buffered x block + double-buffered out block +
    # room for two f32 intermediates of the widest layer inside the body.
    bytes_per_row = 2 * K0 * itemsize + 2 * n_out * itemsize + 2 * max_width * 4
    act_budget = 24 * 1024 * 1024              # leave room for weights/scratch
    cap = max(256, min(2048, (act_budget // bytes_per_row) // 8 * 8))
    if M <= cap:
        tm = M                                  # single step, zero overhead
    else:
        # >= 2 grid steps so the "parallel" axis splits across the two
        # TensorCores on v7x; tm multiple of 8 (sublane constraint).
        tm = min(cap, ((pl.cdiv(M, 2) + 7) // 8) * 8)
    grid = (pl.cdiv(M, tm),)

    # x is the only pipelined (blocked) operand.
    # TODO(synk): for latency-oriented configs where tm must stay small, add
    # pipeline_mode=pl.Buffered(3) on this spec to hide exposed DMA.
    in_specs = [pl.BlockSpec((tm, K0), lambda i: (i, 0))]
    flat_args = [x]

    weight_bytes = 0
    flops = 0
    for (w, b) in params:
        k, n = w.shape
        # Grid-invariant operands: whole-array single-copy VMEM residents
        # (no block_shape => no per-step pipelining, no 2x double-buffering).
        in_specs.append(pl.BlockSpec(memory_space=pltpu.MemorySpace.VMEM))
        in_specs.append(pl.BlockSpec(memory_space=pltpu.MemorySpace.VMEM))
        flat_args.extend([w, b])
        weight_bytes += w.size * w.dtype.itemsize + b.size * b.dtype.itemsize
        flops += 2 * M * k * n

    bytes_accessed = x.size * itemsize + weight_bytes + M * n_out * itemsize

    # VMEM budget: resident weights + pipelined x/out blocks + f32
    # intermediates + slack.  Clamp to <= 60 MiB so the fused, weights-
    # resident design stays inside v7x's 64 MiB physical VMEM.
    vmem_needed = weight_bytes + tm * bytes_per_row
    vmem_limit = int(min(max(vmem_needed + (8 << 20), 32 << 20), 60 << 20))

    kernel = functools.partial(_fused_mlp_kernel, num_layers=num_layers)
    return pl.pallas_call(
        kernel,
        out_shape=jax.ShapeDtypeStruct((M, n_out), x.dtype),
        grid=grid,
        in_specs=in_specs,
        # n_out < 128 lanes => masked partial stores; output bytes are small
        # relative to the x stream, so lane-dense repacking is not worth it.
        out_specs=pl.BlockSpec((tm, n_out), lambda i: (i, 0)),
        compiler_params=pltpu.CompilerParams(
            dimension_semantics=("parallel",),
            vmem_limit_bytes=vmem_limit),
        cost_estimate=pl.CostEstimate(
            flops=flops, transcendentals=0, bytes_accessed=bytes_accessed),
    )(*flat_args)


# ----------------------------------------------------------------------------
# Encoder (mirrors the PyTorch module's forward semantics)
# ----------------------------------------------------------------------------
def init_linear(key, in_dim, out_dim, dtype=jnp.float32):
    """Deterministic PyTorch-style init: U(-1/sqrt(in), 1/sqrt(in))."""
    kw, kb = jax.random.split(key)
    bound = 1.0 / (in_dim ** 0.5)
    # Weight stored transposed (in, out); bias stored (1, out).
    w = jax.random.uniform(kw, (in_dim, out_dim), dtype, -bound, bound)
    b = jax.random.uniform(kb, (1, out_dim), dtype, -bound, bound)
    return w, b


class EncoderPallas:
    def __init__(self, key, x_dim, h_dim1, h_dim2, h_dim3,
                 h_dim4, h_dim5, h_dim6, compute_dtype=jnp.float32):
        dims = [x_dim, h_dim1, h_dim2, h_dim3]
        for d in (h_dim4, h_dim5, h_dim6):
            if d > 0:
                dims.append(d)
        keys = jax.random.split(key, len(dims) - 1)
        self.params = [init_linear(k, dims[i], dims[i + 1])
                       for i, k in enumerate(keys)]
        # Mirror the PyTorch forward's branch order (h_dim6, then 5, then 4).
        # A "gapped" config (e.g. h_dim4 == 0 but h_dim6 > 0) would reference
        # a nonexistent fc layer in the original module, so reject it instead
        # of silently truncating.
        if h_dim6 > 0:
            if not (h_dim4 > 0 and h_dim5 > 0):
                raise ValueError("h_dim6 > 0 requires h_dim4 > 0 and h_dim5 > 0")
            self.n_used = 6
        elif h_dim5 > 0:
            if not h_dim4 > 0:
                raise ValueError("h_dim5 > 0 requires h_dim4 > 0")
            self.n_used = 5
        elif h_dim4 > 0:
            self.n_used = 4
        else:
            self.n_used = 3
        if compute_dtype != jnp.float32:
            # bf16 weights: halved HBM/VMEM weight traffic, native MXU rate on
            # v6e/v7x.  Biases stay f32 (bias-add/ReLU done in f32).
            self.params = [(w.astype(compute_dtype), b) for (w, b) in self.params]

    def __call__(self, x):
        return fused_mlp_pallas(x, self.params[: self.n_used])


# Pure-JAX reference that mirrors the kernel math exactly.
def encoder_ref(enc, x):
    h = x.astype(jnp.float32)
    for i, (w, b) in enumerate(enc.params[: enc.n_used]):
        if w.dtype == jnp.float32:
            acc = jnp.dot(h, w, preferred_element_type=jnp.float32,
                          precision=jax.lax.Precision.HIGHEST)
        else:
            acc = jnp.dot(h.astype(w.dtype), w,
                          preferred_element_type=jnp.float32)
        h = acc + b.astype(jnp.float32)
        if i < enc.n_used - 1:
            h = jax.nn.relu(h)
    return h.astype(x.dtype)


if __name__ == "__main__":
    key = jax.random.PRNGKey(0)
    k_params, k_x, k_x2 = jax.random.split(key, 3)

    # Small, module-consistent shapes: batch=8, x_dim=32, hidden dims below.
    batch, x_dim = 8, 32
    h1, h2, h3, h4, h5, h6 = 64, 48, 32, 24, 16, 8

    # --- f32 path (single grid step; exact vs full-precision reference) -----
    enc = EncoderPallas(k_params, x_dim, h1, h2, h3, h4, h5, h6)
    x = jax.random.normal(k_x, (batch, x_dim), jnp.float32)
    out = jax.block_until_ready(enc(x))
    ref = encoder_ref(enc, x)
    assert out.shape == (batch, h6), out.shape
    assert jnp.allclose(out, ref, atol=1e-5, rtol=1e-5), "f32 mismatch"

    # --- large batch: multi-step 'parallel' grid with a partial last tile ---
    big_m = 4100
    xb = jax.random.normal(k_x2, (big_m, x_dim), jnp.float32)
    out_b = jax.block_until_ready(enc(xb))
    ref_b = encoder_ref(enc, xb)
    assert out_b.shape == (big_m, h6), out_b.shape
    assert jnp.allclose(out_b, ref_b, atol=1e-4, rtol=1e-4), "tiled mismatch"

    # --- bf16 compute path (f32 accumulation) --------------------------------
    enc_bf16 = EncoderPallas(k_params, x_dim, h1, h2, h3, h4, h5, h6,
                             compute_dtype=jnp.bfloat16)
    out_bf16 = jax.block_until_ready(enc_bf16(x))
    ref_bf16 = encoder_ref(enc_bf16, x)
    assert jnp.allclose(out_bf16, ref_bf16, atol=2e-2, rtol=2e-2), "bf16 mismatch"

    print("KERNEL_OK")
</pallas_src>

<mosaic_0001>
module attributes {stable_mosaic.version = 11 : i64} {
  func.func @_fused_mlp_kernel(%arg0: i32, %arg1: memref<8x32xf32, #tpu.memory_space<vmem>>, %arg2: memref<32x64xf32, #tpu.memory_space<vmem>>, %arg3: memref<1x64xf32, #tpu.memory_space<vmem>>, %arg4: memref<64x48xf32, #tpu.memory_space<vmem>>, %arg5: memref<1x48xf32, #tpu.memory_space<vmem>>, %arg6: memref<48x32xf32, #tpu.memory_space<vmem>>, %arg7: memref<1x32xf32, #tpu.memory_space<vmem>>, %arg8: memref<32x24xf32, #tpu.memory_space<vmem>>, %arg9: memref<1x24xf32, #tpu.memory_space<vmem>>, %arg10: memref<24x16xf32, #tpu.memory_space<vmem>>, %arg11: memref<1x16xf32, #tpu.memory_space<vmem>>, %arg12: memref<16x8xf32, #tpu.memory_space<vmem>>, %arg13: memref<1x8xf32, #tpu.memory_space<vmem>>, %arg14: memref<8x8xf32, #tpu.memory_space<vmem>>) attributes {dimension_semantics = [#tpu.dimension_semantics<parallel>], iteration_bounds = array<i64: 1>, scalar_prefetch = 0 : i64, scratch_operands = 0 : i64, tpu.core_type = #tpu.core_type<tc>, window_params = [{transform_indices = @transform_0, window_bounds = array<i64: 8, 32>}, {pipeline_mode = #tpu.pipeline_mode<synchronous>, transform_indices = @transform_1, window_bounds = array<i64: 32, 64>}, {pipeline_mode = #tpu.pipeline_mode<synchronous>, transform_indices = @transform_2, window_bounds = array<i64: 1, 64>}, {pipeline_mode = #tpu.pipeline_mode<synchronous>, transform_indices = @transform_3, window_bounds = array<i64: 64, 48>}, {pipeline_mode = #tpu.pipeline_mode<synchronous>, transform_indices = @transform_4, window_bounds = array<i64: 1, 48>}, {pipeline_mode = #tpu.pipeline_mode<synchronous>, transform_indices = @transform_5, window_bounds = array<i64: 48, 32>}, {pipeline_mode = #tpu.pipeline_mode<synchronous>, transform_indices = @transform_6, window_bounds = array<i64: 1, 32>}, {pipeline_mode = #tpu.pipeline_mode<synchronous>, transform_indices = @transform_7, window_bounds = array<i64: 32, 24>}, {pipeline_mode = #tpu.pipeline_mode<synchronous>, transform_indices = @transform_8, window_bounds = array<i64: 1, 24>}, {pipeline_mode = #tpu.pipeline_mode<synchronous>, transform_indices = @transform_9, window_bounds = array<i64: 24, 16>}, {pipeline_mode = #tpu.pipeline_mode<synchronous>, transform_indices = @transform_10, window_bounds = array<i64: 1, 16>}, {pipeline_mode = #tpu.pipeline_mode<synchronous>, transform_indices = @transform_11, window_bounds = array<i64: 16, 8>}, {pipeline_mode = #tpu.pipeline_mode<synchronous>, transform_indices = @transform_12, window_bounds = array<i64: 1, 8>}, {transform_indices = @transform_13, window_bounds = array<i64: 8, 8>}]} {
    %c0 = arith.constant 0 : index
    %c0_0 = arith.constant 0 : index
    %0 = vector.load %arg1[%c0, %c0_0] : memref<8x32xf32, #tpu.memory_space<vmem>>, vector<8x32xf32>
    %c0_1 = arith.constant 0 : index
    %c0_2 = arith.constant 0 : index
    %1 = vector.load %arg2[%c0_1, %c0_2] : memref<32x64xf32, #tpu.memory_space<vmem>>, vector<32x64xf32>
    %c0_3 = arith.constant 0 : index
    %c0_4 = arith.constant 0 : index
    %2 = vector.load %arg3[%c0_3, %c0_4] : memref<1x64xf32, #tpu.memory_space<vmem>>, vector<1x64xf32>
    %cst = arith.constant dense<0.000000e+00> : vector<8x64xf32>
    %3 = tpu.matmul %0, %1, %cst {dimension_numbers = #tpu.dot_dimension_numbers<[1], [0], [0], [1], [0, 0, 1, 1], [], []>, precision = #tpu.contract_precision<fp32>} : vector<8x32xf32>, vector<32x64xf32>, vector<8x64xf32> -> vector<8x64xf32>
    %4 = vector.broadcast %2 : vector<1x64xf32> to vector<8x64xf32>
    %5 = arith.addf %3, %4 : vector<8x64xf32>
    %cst_5 = arith.constant 0.000000e+00 : f32
    %6 = vector.broadcast %cst_5 : f32 to vector<8x64xf32>
    %7 = arith.maximumf %5, %6 : vector<8x64xf32>
    %c0_6 = arith.constant 0 : index
    %c0_7 = arith.constant 0 : index
    %8 = vector.load %arg4[%c0_6, %c0_7] : memref<64x48xf32, #tpu.memory_space<vmem>>, vector<64x48xf32>
    %c0_8 = arith.constant 0 : index
    %c0_9 = arith.constant 0 : index
    %9 = vector.load %arg5[%c0_8, %c0_9] : memref<1x48xf32, #tpu.memory_space<vmem>>, vector<1x48xf32>
    %cst_10 = arith.constant dense<0.000000e+00> : vector<8x48xf32>
    %10 = tpu.matmul %7, %8, %cst_10 {dimension_numbers = #tpu.dot_dimension_numbers<[1], [0], [0], [1], [0, 0, 1, 1], [], []>, precision = #tpu.contract_precision<fp32>} : vector<8x64xf32>, vector<64x48xf32>, vector<8x48xf32> -> vector<8x48xf32>
    %11 = vector.broadcast %9 : vector<1x48xf32> to vector<8x48xf32>
    %12 = arith.addf %10, %11 : vector<8x48xf32>
    %cst_11 = arith.constant 0.000000e+00 : f32
    %13 = vector.broadcast %cst_11 : f32 to vector<8x48xf32>
    %14 = arith.maximumf %12, %13 : vector<8x48xf32>
    %c0_12 = arith.constant 0 : index
    %c0_13 = arith.constant 0 : index
    %15 = vector.load %arg6[%c0_12, %c0_13] : memref<48x32xf32, #tpu.memory_space<vmem>>, vector<48x32xf32>
    %c0_14 = arith.constant 0 : index
    %c0_15 = arith.constant 0 : index
    %16 = vector.load %arg7[%c0_14, %c0_15] : memref<1x32xf32, #tpu.memory_space<vmem>>, vector<1x32xf32>
    %cst_16 = arith.constant dense<0.000000e+00> : vector<8x32xf32>
    %17 = tpu.matmul %14, %15, %cst_16 {dimension_numbers = #tpu.dot_dimension_numbers<[1], [0], [0], [1], [0, 0, 1, 1], [], []>, precision = #tpu.contract_precision<fp32>} : vector<8x48xf32>, vector<48x32xf32>, vector<8x32xf32> -> vector<8x32xf32>
    %18 = vector.broadcast %16 : vector<1x32xf32> to vector<8x32xf32>
    %19 = arith.addf %17, %18 : vector<8x32xf32>
    %cst_17 = arith.constant 0.000000e+00 : f32
    %20 = vector.broadcast %cst_17 : f32 to vector<8x32xf32>
    %21 = arith.maximumf %19, %20 : vector<8x32xf32>
    %c0_18 = arith.constant 0 : index
    %c0_19 = arith.constant 0 : index
    %22 = vector.load %arg8[%c0_18, %c0_19] : memref<32x24xf32, #tpu.memory_space<vmem>>, vector<32x24xf32>
    %c0_20 = arith.constant 0 : index
    %c0_21 = arith.constant 0 : index
    %23 = vector.load %arg9[%c0_20, %c0_21] : memref<1x24xf32, #tpu.memory_space<vmem>>, vector<1x24xf32>
    %cst_22 = arith.constant dense<0.000000e+00> : vector<8x24xf32>
    %24 = tpu.matmul %21, %22, %cst_22 {dimension_numbers = #tpu.dot_dimension_numbers<[1], [0], [0], [1], [0, 0, 1, 1], [], []>, precision = #tpu.contract_precision<fp32>} : vector<8x32xf32>, vector<32x24xf32>, vector<8x24xf32> -> vector<8x24xf32>
    %25 = vector.broadcast %23 : vector<1x24xf32> to vector<8x24xf32>
    %26 = arith.addf %24, %25 : vector<8x24xf32>
    %cst_23 = arith.constant 0.000000e+00 : f32
    %27 = vector.broadcast %cst_23 : f32 to vector<8x24xf32>
    %28 = arith.maximumf %26, %27 : vector<8x24xf32>
    %c0_24 = arith.constant 0 : index
    %c0_25 = arith.constant 0 : index
    %29 = vector.load %arg10[%c0_24, %c0_25] : memref<24x16xf32, #tpu.memory_space<vmem>>, vector<24x16xf32>
    %c0_26 = arith.constant 0 : index
    %c0_27 = arith.constant 0 : index
    %30 = vector.load %arg11[%c0_26, %c0_27] : memref<1x16xf32, #tpu.memory_space<vmem>>, vector<1x16xf32>
    %cst_28 = arith.constant dense<0.000000e+00> : vector<8x16xf32>
    %31 = tpu.matmul %28, %29, %cst_28 {dimension_numbers = #tpu.dot_dimension_numbers<[1], [0], [0], [1], [0, 0, 1, 1], [], []>, precision = #tpu.contract_precision<fp32>} : vector<8x24xf32>, vector<24x16xf32>, vector<8x16xf32> -> vector<8x16xf32>
    %32 = vector.broadcast %30 : vector<1x16xf32> to vector<8x16xf32>
    %33 = arith.addf %31, %32 : vector<8x16xf32>
    %cst_29 = arith.constant 0.000000e+00 : f32
    %34 = vector.broadcast %cst_29 : f32 to vector<8x16xf32>
    %35 = arith.maximumf %33, %34 : vector<8x16xf32>
    %c0_30 = arith.constant 0 : index
    %c0_31 = arith.constant 0 : index
    %36 = vector.load %arg12[%c0_30, %c0_31] : memref<16x8xf32, #tpu.memory_space<vmem>>, vector<16x8xf32>
    %c0_32 = arith.constant 0 : index
    %c0_33 = arith.constant 0 : index
    %37 = vector.load %arg13[%c0_32, %c0_33] : memref<1x8xf32, #tpu.memory_space<vmem>>, vector<1x8xf32>
    %cst_34 = arith.constant dense<0.000000e+00> : vector<8x8xf32>
    %38 = tpu.matmul %35, %36, %cst_34 {dimension_numbers = #tpu.dot_dimension_numbers<[1], [0], [0], [1], [0, 0, 1, 1], [], []>, precision = #tpu.contract_precision<fp32>} : vector<8x16xf32>, vector<16x8xf32>, vector<8x8xf32> -> vector<8x8xf32>
    %39 = vector.broadcast %37 : vector<1x8xf32> to vector<8x8xf32>
    %40 = arith.addf %38, %39 : vector<8x8xf32>
    %c0_35 = arith.constant 0 : index
    %c0_36 = arith.constant 0 : index
    %41 = vector.load %arg14[%c0_35, %c0_36] : memref<8x8xf32, #tpu.memory_space<vmem>>, vector<8x8xf32>
    tpu.vector_store %arg14[%c0_35, %c0_36], %40 {strides = array<i32>} : memref<8x8xf32, #tpu.memory_space<vmem>>, vector<8x8xf32>,
    return
  }
  func.func @transform_0(%arg0: i32) -> (i32, i32) {
    %c0_i32 = arith.constant 0 : i32
    %c0_i32_0 = arith.constant 0 : i32
    return %arg0, %c0_i32 : i32, i32
  }
  func.func @transform_1(%arg0: i32) -> (i32, i32) {
    %c0_i32 = arith.constant 0 : i32
    %c0_i32_0 = arith.constant 0 : i32
    %c0_i32_1 = arith.constant 0 : i32
    return %c0_i32, %c0_i32_0 : i32, i32
  }
  func.func @transform_2(%arg0: i32) -> (i32, i32) {
    %c0_i32 = arith.constant 0 : i32
    %c0_i32_0 = arith.constant 0 : i32
    %c0_i32_1 = arith.constant 0 : i32
    return %c0_i32, %c0_i32_0 : i32, i32
  }
  func.func @transform_3(%arg0: i32) -> (i32, i32) {
    %c0_i32 = arith.constant 0 : i32
    %c0_i32_0 = arith.constant 0 : i32
    %c0_i32_1 = arith.constant 0 : i32
    return %c0_i32, %c0_i32_0 : i32, i32
  }
  func.func @transform_4(%arg0: i32) -> (i32, i32) {
    %c0_i32 = arith.constant 0 : i32
    %c0_i32_0 = arith.constant 0 : i32
    %c0_i32_1 = arith.constant 0 : i32
    return %c0_i32, %c0_i32_0 : i32, i32
  }
  func.func @transform_5(%arg0: i32) -> (i32, i32) {
    %c0_i32 = arith.constant 0 : i32
    %c0_i32_0 = arith.constant 0 : i32
    %c0_i32_1 = arith.constant 0 : i32
    return %c0_i32, %c0_i32_0 : i32, i32
  }
  func.func @transform_6(%arg0: i32) -> (i32, i32) {
    %c0_i32 = arith.constant 0 : i32
    %c0_i32_0 = arith.constant 0 : i32
    %c0_i32_1 = arith.constant 0 : i32
    return %c0_i32, %c0_i32_0 : i32, i32
  }
  func.func @transform_7(%arg0: i32) -> (i32, i32) {
    %c0_i32 = arith.constant 0 : i32
    %c0_i32_0 = arith.constant 0 : i32
    %c0_i32_1 = arith.constant 0 : i32
    return %c0_i32, %c0_i32_0 : i32, i32
  }
  func.func @transform_8(%arg0: i32) -> (i32, i32) {
    %c0_i32 = arith.constant 0 : i32
    %c0_i32_0 = arith.constant 0 : i32
    %c0_i32_1 = arith.constant 0 : i32
    return %c0_i32, %c0_i32_0 : i32, i32
  }
  func.func @transform_9(%arg0: i32) -> (i32, i32) {
    %c0_i32 = arith.constant 0 : i32
    %c0_i32_0 = arith.constant 0 : i32
    %c0_i32_1 = arith.constant 0 : i32
    return %c0_i32, %c0_i32_0 : i32, i32
  }
  func.func @transform_10(%arg0: i32) -> (i32, i32) {
    %c0_i32 = arith.constant 0 : i32
    %c0_i32_0 = arith.constant 0 : i32
    %c0_i32_1 = arith.constant 0 : i32
    return %c0_i32, %c0_i32_0 : i32, i32
  }
  func.func @transform_11(%arg0: i32) -> (i32, i32) {
    %c0_i32 = arith.constant 0 : i32
    %c0_i32_0 = arith.constant 0 : i32
    %c0_i32_1 = arith.constant 0 : i32
    return %c0_i32, %c0_i32_0 : i32, i32
  }
  func.func @transform_12(%arg0: i32) -> (i32, i32) {
    %c0_i32 = arith.constant 0 : i32
    %c0_i32_0 = arith.constant 0 : i32
    %c0_i32_1 = arith.constant 0 : i32
    return %c0_i32, %c0_i32_0 : i32, i32
  }
  func.func @transform_13(%arg0: i32) -> (i32, i32) {
    %c0_i32 = arith.constant 0 : i32
    %c0_i32_0 = arith.constant 0 : i32
    return %arg0, %c0_i32 : i32, i32
  }
}

</mosaic_0001>

<bundles_post_ra>
// kernel: tpu_custom_call.1
= control target key start
LH: loop header
LB: loop body
LE: loop exit
PB: predicated region body
PF: predicated region fallthrough
CT: control target
= control target key end

     0   :  { %vm54_vm0 = vcmask 261120   ;;  %s1569_s0 = inlined_call_operand.vmem [shape: f32[8,32], index: 0, kind: input, shape index: {}]   ;;  %s1570_s1 = inlined_call_operand.vmem [shape: f32[32,64], index: 1, kind: input, shape index: {}]   ;;  %s1571_s2 = inlined_call_operand.vmem [shape: f32[1,64], index: 2, kind: input, shape index: {}]   ;;  %s1572_s3 = inlined_call_operand.vmem [shape: f32[64,48], index: 3, kind: input, shape index: {}]   ;;  %s1573_s4 = inlined_call_operand.vmem [shape: f32[1,48], index: 4, kind: input, shape index: {}]   ;;  %s1574_s5 = inlined_call_operand.vmem [shape: f32[48,32], index: 5, kind: input, shape index: {}]   ;;  %s1575_s6 = inlined_call_operand.vmem [shape: f32[1,32], index: 6, kind: input, shape index: {}]   ;;  %s1576_s7 = inlined_call_operand.vmem [shape: f32[32,24], index: 7, kind: input, shape index: {}]   ;;  %s1577_s8 = inlined_call_operand.vmem [shape: f32[1,24], index: 8, kind: input, shape index: {}]   ;;  %s1578_s9 = inlined_call_operand.vmem [shape: f32[24,16], index: 9, kind: input, shape index: {}]   ;;  %s1579_s10 = inlined_call_operand.vmem [shape: f32[1,16], index: 10, kind: input, shape index: {}]   ;;  %s1580_s11 = inlined_call_operand.vmem [shape: f32[16,8], index: 11, kind: input, shape index: {}]   ;;  %s1581_s12 = inlined_call_operand.vmem [shape: f32[1,8], index: 12, kind: input, shape index: {}]   ;;  %s1582_s13 = inlined_call_operand.hbm [shape: f32[8,8], index: 13, kind: output, shape index: {}]  }
   0x1   :  { %v49_v0 = vld [vmem:[%s1570_s1 + $0x18] sm:$0xff]  ;;  %v48_v1 = vld [vmem:[%s1570_s1 + $0x10] sm:$0xff]  ;;  %v47_v2 = vld [vmem:[%s1570_s1 + $0x8] sm:$0xff] }
   0x2   :  { %v1405_v3 = vand.u32 4294901760, %v49_v0  ;;  %v1407_v4 = vand.u32 4294901760, %v48_v1  ;;  %v1409_v5 = vand.u32 4294901760, %v47_v2  ;;  %v46_v6 = vld [vmem:[%s1570_s1] sm:$0xff]  ;;  %v251_v8 = vld [vmem:[%s1572_s3 + $0x38] sm:$0xff]  ;;  %v250_v12 = vld [vmem:[%s1572_s3 + $0x30] sm:$0xff] }
   0x3   :  { %v45_v7 = vld [vmem:[%s1569_s0] sm:$0xff]  ;;  %v1420_v9 = vand.u32 4294901760, %v46_v6  ;;  %v1423_v11 = vand.u32 4294901760, %v251_v8  ;;  %v1437_v19 = vand.u32 4294901760, %v250_v12 }
   0x4   :  { %v56_v10 = vsel %vm54_vm0, %v45_v7, 0  ;;  %v100_v13 = vsub.f32 %v49_v0, %v1405_v3  ;;  %71 = vmatpush.msra.mxu0 %v1405_v3  ;;  %v106_v14 = vsub.f32 %v48_v1, %v1407_v4  ;;  %171 = vmatpush.msra.mxu3 %v1405_v3  ;;  %v112_v15 = vsub.f32 %v47_v2, %v1409_v5 }
   0x5   :  { %v78_v16 = vand.u32 4294901760, %v56_v10  ;;  %v118_v17 = vsub.f32 %v46_v6, %v1420_v9  ;;  %v1435_v18 = vsub.f32 %v251_v8, %v1423_v11  ;;  %v1443_v26 = vsub.f32 %v250_v12, %v1437_v19 }
   0x6   :  { %142 = vmatpush.msra.mxu2 %v100_v13  ;;  %73 = vmatpush.msra.mxu0 %v1407_v4  ;;  %v101_v20 = vand.u32 4294901760, %v100_v13  ;;  %v107_v21 = vand.u32 4294901760, %v106_v14  ;;  %v113_v23 = vand.u32 4294901760, %v112_v15 }
   0x7   :  { %v79_v22 = vsub.f32 %v56_v10, %v78_v16  ;;  %173 = vmatpush.msra.mxu3 %v1407_v4  ;;  %v119_v24 = vand.u32 4294901760, %v118_v17  ;;  %v303_v25 = vand.u32 4294901760, %v1435_v18 }
   0x8   :  { %18 = vsyncpa [#allocation3], 0  ;;  %145 = vmatpush.msra.mxu2 %v106_v14  ;;  %v102_v27 = vsub.f32 %v100_v13, %v101_v20  ;;  %75 = vmatpush.msra.mxu0 %v1409_v5  ;;  %v108_v28 = vsub.f32 %v106_v14, %v107_v21  ;;  %v114_v29 = vsub.f32 %v112_v15, %v113_v23  ;;  %v309_v32 = vand.u32 4294901760, %v1443_v26  ;;  %v249_v43 = vld [vmem:[%s1572_s3 + $0x28] sm:$0xff]  ;;  %v248_v45 = vld [vmem:[%s1572_s3 + $0x20] sm:$0xff]  ;;  %s1325_s24 = smov [#allocation2]  }
   0x9   :  { %v80_v30 = vand.u32 4294901760, %v79_v22  ;;  %175 = vmatpush.msra.mxu3 %v1409_v5  ;;  %v304_v31 = vsub.f32 %v1435_v18, %v303_v25  ;;  %v120_v36 = vsub.f32 %v118_v17, %v119_v24  ;;  %v1469_v44 = vand.u32 4294901760, %v249_v43  ;;  %v247_v48 = vld [vmem:[%s1572_s3 + $0x18] sm:$0xff]  ;;  %v246_v52 = vld [vmem:[%s1572_s3 + $0x10] sm:$0xff]  ;;  %v245_v57 = vld [vmem:[%s1572_s3 + $0x8] sm:$0xff]  ;;  %s1283_s26 = sshll.u32 %s1582_s13, 4  ;;  %s1284_s26 = int_to_ptr.hbm [resolvable:$true] %s1283_s26 }
   0xa   :  { %v103_v33 = vand.u32 4294901760, %v102_v27  ;;  %148 = vmatpush.msra.mxu2 %v112_v15  ;;  %v109_v34 = vand.u32 4294901760, %v108_v28  ;;  %77 = vmatpush.msra.mxu0 %v1420_v9  ;;  %v310_v38 = vsub.f32 %v1443_v26, %v309_v32  ;;  %v115_v39 = vand.u32 4294901760, %v114_v29  ;;  %v244_v63 = vld [vmem:[%s1572_s3] sm:$0xff] }
   0xb   :  { %v81_v35 = vsub.f32 %v79_v22, %v80_v30  ;;  %177 = vmatpush.msra.mxu3 %v1420_v9  ;;  %v305_v37 = vand.u32 4294901760, %v304_v31  ;;  %v121_v42 = vand.u32 4294901760, %v120_v36  ;;  %v314_v46 = vsub.f32 %v249_v43, %v1469_v44 }
   0xc   :  { %200 = vmatpush.msrb.mxu0 %v101_v20  ;;  %104 = vmatpush.msra.mxu1 %v103_v33  ;;  %v311_v41 = vand.u32 4294901760, %v310_v38  ;;  %v1475_v47 = vand.u32 4294901760, %v248_v45  ;;  %v276_v51 = vand.u32 4294901760, %v247_v48  ;;  %v278_v56 = vand.u32 4294901760, %v246_v52 }
   0xd   :  { %151 = vmatpush.msra.mxu2 %v118_v17  ;;  %v82_v40 = vand.u32 4294901760, %v81_v35  ;;  %181 = vmatmul.f32.vlgmr.msra.gmra.mxu3 %v80_v30  ;;  %v315_v49 = vand.u32 4294901760, %v314_v46  ;;  %v280_v62 = vand.u32 4294901760, %v245_v57  ;;  %vm256_vm1 = vcmask 523264   ;;  %v503_v35 = vld [vmem:[%s1574_s5 + $0x28] sm:$0xff] }
   0xe   :  { %154 = vmatmul.f32.vlgmr.msra.gmra.mxu2 %v79_v22  ;;  %110 = vmatpush.msra.mxu1 %v109_v34  ;;  %v320_v50 = vsub.f32 %v248_v45, %v1475_v47  ;;  %v326_v55 = vsub.f32 %v247_v48, %v276_v51  ;;  %v332_v61 = vsub.f32 %v246_v52, %v278_v56  ;;  %v522_v36 = vand.u32 4294901760, %v503_v35 }
   0xf   :  { %83 = vmatmul.f32.vlgmr.msra.gmra.mxu0 %v82_v40  ;;  %306 = vmatpush.msrb.mxu3 %v305_v37  ;;  %v316_v53 = vsub.f32 %v314_v46, %v315_v49  ;;  %v502_v37 = vld [vmem:[%s1574_s5 + $0x20] sm:$0xff]  ;;  %v501_v40 = vld [vmem:[%s1574_s5 + $0x18] sm:$0xff]  ;;  %vm508_vm2 = vcmask 392192   ;;  %vm928_vm3 = vcmask 195584   ;;  %vm1111_vm4 = vcmask 130048  }
  0x10   :  { %204 = vmatpush.msrb.mxu0 %v107_v21  ;;  %116 = vmatpush.msra.mxu1 %v115_v39  ;;  %v321_v54 = vand.u32 4294901760, %v320_v50  ;;  %v327_v60 = vand.u32 4294901760, %v326_v55  ;;  %v333_v2 = vand.u32 4294901760, %v332_v61  ;;  %v554_v38 = vsub.f32 %v503_v35, %v522_v36 }
  0x11   :  { %269 = vmatpush.msrb.mxu2 %v1423_v11  ;;  %312 = vmatpush.msrb.mxu3 %v311_v41  ;;  %v317_v58 = vand.u32 4294901760, %v316_v53  ;;  %v524_v39 = vand.u32 4294901760, %v502_v37  ;;  %v526_v43 = vand.u32 4294901760, %v501_v40  ;;  %vm1274_vm5 = vcmask 64512  }
  0x12   :  { %208 = vmatpush.msrb.mxu0 %v113_v23  ;;  %122 = vmatpush.msra.mxu1 %v121_v42  ;;  %v322_v59 = vsub.f32 %v320_v50, %v321_v54  ;;  %v328_v1 = vsub.f32 %v326_v55, %v327_v60  ;;  %v334_v6 = vsub.f32 %v332_v61, %v333_v2  ;;  %v555_v41 = vand.u32 4294901760, %v554_v38 }
  0x13   :  { %271 = vmatpush.msrb.mxu2 %v1437_v19  ;;  %124 = vmatmul.f32.vlgmr.msra.gmra.mxu1 %v78_v16  ;;  %v560_v42 = vsub.f32 %v502_v37, %v524_v39 }
  0x14   :  { %212 = vmatpush.msrb.mxu0 %v119_v24  ;;  %231 = vmatpush.msrb.mxu1 %v1405_v3  ;;  %v323_v0 = vand.u32 4294901760, %v322_v59  ;;  %v282_v3 = vand.u32 4294901760, %v244_v63  ;;  %v556_v45 = vsub.f32 %v554_v38, %v555_v41 }
  0x15   :  { %273 = vmatpush.msrb.mxu2 %v1469_v44  ;;  %318 = vmatpush.msrb.mxu3 %v317_v58 }
  0x16   :  { %364 = vmatpush.msra.mxu0 %v1435_v18  ;;  %233 = vmatpush.msrb.mxu1 %v1407_v4  ;;  %v338_v4 = vsub.f32 %v245_v57, %v280_v62  ;;  %v344_v7 = vsub.f32 %v244_v63, %v282_v3 }
  0x17   :  { %214 = vmatmul.f32.vlgmr.msrb.gmra.mxu0 %v78_v16  ;;  %275 = vmatpush.msrb.mxu2 %v1475_v47 }
  0x18   :  { %367 = vmatpush.msra.mxu0 %v1443_v26  ;;  %235 = vmatpush.msrb.mxu1 %v1409_v5  ;;  %v329_v5 = vand.u32 4294901760, %v328_v1  ;;  %v339_v8 = vand.u32 4294901760, %v338_v4  ;;  %v345_v10 = vand.u32 4294901760, %v344_v7 }
  0x19   :  { %277 = vmatpush.msrb.mxu2 %v276_v51  ;;  %324 = vmatpush.msrb.mxu3 %v323_v0 }
  0x1a   :  { %237 = vmatpush.msrb.mxu1 %v1420_v9  ;;  %370 = vmatpush.msra.mxu0 %v314_v46  ;;  %v335_v9 = vand.u32 4294901760, %v334_v6  ;;  %v340_v12 = vsub.f32 %v338_v4, %v339_v8  ;;  %v346_v13 = vsub.f32 %v344_v7, %v345_v10  ;;  %v561_v46 = vand.u32 4294901760, %v560_v42 }
  0x1b   :  { %239 = vmatmul.f32.vlgmr.msrb.gmra.mxu1 %v78_v16  ;;  %279 = vmatpush.msrb.mxu2 %v278_v56  ;;  %v1293_v16 = vld [vmem:[%s1571_s2] ss:$0 sm:$0xff] }
  0x1c   :  { %401 = vmatpush.msra.mxu1 %v1423_v11  ;;  %373 = vmatpush.msra.mxu0 %v320_v50  ;;  %v341_v14 = vand.u32 4294901760, %v340_v12  ;;  %v347_v15 = vand.u32 4294901760, %v346_v13  ;;  %v557_v50 = vand.u32 4294901760, %v556_v45 }
  0x1d   :  { %281 = vmatpush.msrb.mxu2 %v280_v62  ;;  %330 = vmatpush.msrb.mxu3 %v329_v5 }
  0x1e   :  { %403 = vmatpush.msra.mxu1 %v1437_v19  ;;  %376 = vmatpush.msra.mxu0 %v326_v55  ;;  %v498_v55 = vld [vmem:[%s1574_s5] sm:$0xff] }
  0x1f   :  { %283 = vmatpush.msrb.mxu2 %v282_v3  ;;  %336 = vmatpush.msrb.mxu3 %v335_v9  ;;  %v532_v59 = vand.u32 4294901760, %v498_v55 }
  0x20   :  { %405 = vmatpush.msra.mxu1 %v1469_v44  ;;  %379 = vmatpush.msra.mxu0 %v332_v61 }
  0x21   :  { %434 = vmatpush.msra.mxu2 %v303_v25  ;;  %342 = vmatpush.msrb.mxu3 %v341_v14  ;;  %v584_v63 = vsub.f32 %v498_v55, %v532_v59 }
  0x22   :  { %407 = vmatpush.msra.mxu1 %v1475_v47  ;;  %382 = vmatpush.msra.mxu0 %v338_v4 }
  0x23   :  { %438 = vmatpush.msra.mxu2 %v309_v32  ;;  %348 = vmatpush.msrb.mxu3 %v347_v15 }
  0x24   :  { %409 = vmatpush.msra.mxu1 %v276_v51  ;;  %385 = vmatpush.msra.mxu0 %v344_v7  ;;  %v1294_v7 = vld [vmem:[%s1573_s4] ss:$0 sm:$0xff] }
  0x25   :  { %442 = vmatpush.msra.mxu2 %v315_v49  ;;  %477 = vmatpush.msra.mxu3 %v1423_v11  ;;  %v499_v49 = vld [vmem:[%s1574_s5 + $0x8] sm:$0xff] }
  0x26   :  { %411 = vmatpush.msra.mxu1 %v278_v56  ;;  %523 = vmatpush.msrb.mxu0 %v522_v36 }
  0x27   :  { %446 = vmatpush.msra.mxu2 %v321_v54  ;;  %479 = vmatpush.msra.mxu3 %v1437_v19  ;;  %v530_v54 = vand.u32 4294901760, %v499_v49 }
  0x28   :  { %413 = vmatpush.msra.mxu1 %v280_v62  ;;  %525 = vmatpush.msrb.mxu0 %v524_v39 }
  0x29   :  { %450 = vmatpush.msra.mxu2 %v327_v60  ;;  %481 = vmatpush.msra.mxu3 %v1469_v44  ;;  %v500_v44 = vld [vmem:[%s1574_s5 + $0x10] sm:$0xff]  ;;  %v578_v60 = vsub.f32 %v499_v49, %v530_v54  ;;  %s1281_s5 = sshll.u32 %s1325_s24, 4  ;;  %s1282_s5 = int_to_ptr.vmem [resolvable:$true] %s1281_s5 }
  0x2a   :  { %415 = vmatpush.msra.mxu1 %v282_v3  ;;  %v528_v48 = vand.u32 4294901760, %v500_v44  ;;  %527 = vmatpush.msrb.mxu0 %v526_v43 }
  0x2b   :  { %454 = vmatpush.msra.mxu2 %v333_v2  ;;  %483 = vmatpush.msra.mxu3 %v1475_v47  ;;  %v566_v47 = vsub.f32 %v501_v40, %v526_v43  ;;  %v579_v0 = vand.u32 4294901760, %v578_v60  ;;  %v585_v2 = vand.u32 4294901760, %v584_v63 }
  0x2c   :  { %v572_v53 = vsub.f32 %v500_v44, %v528_v48  ;;  %529 = vmatpush.msrb.mxu0 %v528_v48  ;;  %558 = vmatpush.msrb.mxu1 %v557_v50 }
  0x2d   :  { %458 = vmatpush.msra.mxu2 %v339_v8  ;;  %485 = vmatpush.msra.mxu3 %v276_v51  ;;  %v562_v51 = vsub.f32 %v560_v42, %v561_v46  ;;  %v567_v52 = vand.u32 4294901760, %v566_v47  ;;  %v586_v4 = vsub.f32 %v584_v63, %v585_v2 }
  0x2e   :  { %v573_v58 = vand.u32 4294901760, %v572_v53  ;;  %531 = vmatpush.msrb.mxu0 %v530_v54 }
  0x2f   :  { %462 = vmatpush.msra.mxu2 %v345_v10  ;;  %487 = vmatpush.msra.mxu3 %v278_v56  ;;  %v563_v56 = vand.u32 4294901760, %v562_v51  ;;  %v568_v57 = vsub.f32 %v566_v47, %v567_v52  ;;  %v587_v6 = vand.u32 4294901760, %v586_v4  ;;  %v1295_v51 = vld [vmem:[%s1575_s6] ss:$0 sm:$0xff] }
  0x30   :  { %533 = vmatpush.msrb.mxu0 %v532_v59 }
  0x31   :  { %489 = vmatpush.msra.mxu3 %v280_v62  ;;  %564 = vmatpush.msrb.mxu1 %v563_v56  ;;  %v569_v61 = vand.u32 4294901760, %v568_v57  ;;  %v574_v62 = vsub.f32 %v572_v53, %v573_v58 }
  0x33   :  { %491 = vmatpush.msra.mxu3 %v282_v3  ;;  %570 = vmatpush.msrb.mxu1 %v569_v61  ;;  %v575_v1 = vand.u32 4294901760, %v574_v62  ;;  %v580_v3 = vsub.f32 %v578_v60, %v579_v0 }
  0x35   :  { %576 = vmatpush.msrb.mxu1 %v575_v1  ;;  %v581_v5 = vand.u32 4294901760, %v580_v3 }
  0x37   :  { %582 = vmatpush.msrb.mxu1 %v581_v5 }
  0x39   :  { %588 = vmatpush.msrb.mxu1 %v587_v6 }
  0x8c   :  { %v84_v17 = vpop.f32.mrf.mxu0 }
  0x8d   :  { %v85_v11 = vadd.f32 %v1293_v16, %v84_v17 }
  0x90   :  { %v125_v18 = vpop.f32.mrf.mxu1  ;;  %v182_v21 = vpop.f32.mrf.mxu3 }
  0x91   :  { %v155_v20 = vpop.f32.mrf.mxu2  ;;  %v126_v19 = vadd.f32 %v125_v18, %v85_v11 }
  0x93   :  { %v156_v22 = vadd.f32 %v155_v20, %v126_v19 }
  0x94   :  { %v215_v23 = vpop.f32.mrf.mxu0 }
  0x95   :  { %v183_v24 = vadd.f32 %v182_v21, %v156_v22 }
  0x97   :  { %v216_v25 = vadd.f32 %v215_v23, %v183_v24 }
  0x98   :  { %v240_v26 = vpop.f32.mrf.mxu1 }
  0x99   :  { %v241_v27 = vadd.f32 %v240_v26, %v216_v25 }
  0x9b   :  { %v243_v28 = vmax.f32 %v241_v27, 0.0  ;;  %v727_v27 = vld [vmem:[%s1576_s7 + $0x18] sm:$0xff] }
  0x9d   :  { %v258_v29 = vsel %vm256_vm1, %v243_v28, 0  ;;  %v747_v28 = vand.u32 4294901760, %v727_v27 }
  0x9e   :  { %v284_v30 = vand.u32 4294901760, %v258_v29 }
  0xa0   :  { %v285_v31 = vsub.f32 %v258_v29, %v284_v30  ;;  %350 = vmatmul.f32.vlgmr.msrb.gmra.mxu3 %v284_v30  ;;  %v726_v29 = vld [vmem:[%s1576_s7 + $0x10] sm:$0xff] }
  0xa1   :  { %639 = vmatpush.msrb.mxu3 %v522_v36 }
  0xa2   :  { %388 = vmatmul.f32.vlgmr.msra.gmra.mxu0 %v285_v31  ;;  %v286_v32 = vand.u32 4294901760, %v285_v31 }
  0xa3   :  { %641 = vmatpush.msrb.mxu3 %v524_v39  ;;  %670 = vmatpush.msra.mxu0 %v555_v41 }
  0xa4   :  { %419 = vmatmul.f32.vlgmr.msra.gmra.mxu1 %v286_v32  ;;  %v287_v33 = vsub.f32 %v285_v31, %v286_v32  ;;  %v749_v31 = vand.u32 4294901760, %v726_v29  ;;  %v725_v32 = vld [vmem:[%s1576_s7 + $0x8] sm:$0xff] }
  0xa5   :  { %643 = vmatpush.msrb.mxu3 %v526_v43  ;;  %674 = vmatpush.msra.mxu0 %v561_v46  ;;  %v751_v35 = vand.u32 4294901760, %v725_v32 }
  0xa6   :  { %v288_v34 = vand.u32 4294901760, %v287_v33  ;;  %707 = vmatpush.msra.mxu1 %v522_v36  ;;  %v724_v36 = vld [vmem:[%s1576_s7] sm:$0xff] }
  0xa7   :  { %645 = vmatpush.msrb.mxu3 %v528_v48  ;;  %678 = vmatpush.msra.mxu0 %v567_v52  ;;  %v753_v40 = vand.u32 4294901760, %v724_v36 }
  0xa8   :  { %289 = vmatmul.f32.vlgmr.msrb.gmra.mxu2 %v288_v34  ;;  %493 = vmatmul.f32.vlgmr.msra.gmra.mxu3 %v284_v30  ;;  %v783_v34 = vsub.f32 %v726_v29, %v749_v31 }
  0xa9   :  { %606 = vmatpush.msrb.mxu2 %v554_v38  ;;  %647 = vmatpush.msrb.mxu3 %v530_v54  ;;  %v795_v44 = vsub.f32 %v724_v36, %v753_v40 }
  0xaa   :  { %682 = vmatpush.msra.mxu0 %v573_v58  ;;  %709 = vmatpush.msra.mxu1 %v524_v39  ;;  %v784_v38 = vand.u32 4294901760, %v783_v34  ;;  %v789_v39 = vsub.f32 %v725_v32, %v751_v35 }
  0xab   :  { %609 = vmatpush.msrb.mxu2 %v560_v42  ;;  %649 = vmatpush.msrb.mxu3 %v532_v59 }
  0xac   :  { %686 = vmatpush.msra.mxu0 %v579_v0  ;;  %711 = vmatpush.msra.mxu1 %v526_v43  ;;  %v785_v42 = vsub.f32 %v783_v34, %v784_v38  ;;  %v790_v43 = vand.u32 4294901760, %v789_v39 }
  0xad   :  { %612 = vmatpush.msrb.mxu2 %v566_v47  ;;  %v796_v47 = vand.u32 4294901760, %v795_v44 }
  0xae   :  { %690 = vmatpush.msra.mxu0 %v585_v2  ;;  %713 = vmatpush.msra.mxu1 %v528_v48  ;;  %v786_v45 = vand.u32 4294901760, %v785_v42  ;;  %v791_v46 = vsub.f32 %v789_v39, %v790_v43 }
  0xaf   :  { %615 = vmatpush.msrb.mxu2 %v572_v53  ;;  %v797_v49 = vsub.f32 %v795_v44, %v796_v47 }
  0xb0   :  { %464 = vmatmul.f32.vlgmr.msra.gmra.mxu2 %v284_v30  ;;  %715 = vmatpush.msra.mxu1 %v530_v54  ;;  %v777_v30 = vsub.f32 %v727_v27, %v747_v28  ;;  %v792_v48 = vand.u32 4294901760, %v791_v46 }
  0xb1   :  { %618 = vmatpush.msrb.mxu2 %v578_v60  ;;  %v798_v50 = vand.u32 4294901760, %v797_v49 }
  0xb2   :  { %717 = vmatpush.msra.mxu1 %v532_v59  ;;  %v778_v33 = vand.u32 4294901760, %v777_v30 }
  0xb3   :  { %621 = vmatpush.msrb.mxu2 %v584_v63 }
  0xb4   :  { %v779_v37 = vsub.f32 %v777_v30, %v778_v33 }
  0xb5   :  { %748 = vmatpush.msra.mxu2 %v747_v28 }
  0xb6   :  { %v780_v41 = vand.u32 4294901760, %v779_v37 }
  0xb7   :  { %750 = vmatpush.msra.mxu2 %v749_v31 }
  0xb8   :  { %781 = vmatpush.msra.mxu3 %v780_v41 }
  0xb9   :  { %752 = vmatpush.msra.mxu2 %v751_v35 }
  0xba   :  { %787 = vmatpush.msra.mxu3 %v786_v45  ;;  %v1106_v45 = vld [vmem:[%s1580_s11 + $0x8] sm:$0xff] }
  0xbb   :  { %754 = vmatpush.msra.mxu2 %v753_v40  ;;  %v1129_v46 = vand.u32 4294901760, %v1106_v45 }
  0xbc   :  { %793 = vmatpush.msra.mxu3 %v792_v48 }
  0xbd   :  { %v1157_v48 = vsub.f32 %v1106_v45, %v1129_v46 }
  0xbe   :  { %799 = vmatpush.msra.mxu3 %v798_v50 }
  0xbf   :  { %v1158_v50 = vand.u32 4294901760, %v1157_v48 }
 0x11f   :  { %v389_v13 = vpop.f32.mrf.mxu0 }
 0x121   :  { %v420_v15 = vpop.f32.mrf.mxu1 }
 0x123   :  { %v351_v8 = vpop.f32.mrf.mxu3 }
 0x12b   :  { %v290_v9 = vpop.f32.mrf.mxu2  ;;  %v494_v18 = vpop.f32.mrf.mxu3 }
 0x12c   :  { %v291_v10 = vadd.f32 %v1294_v7, %v290_v9  ;;  %v923_v7 = vld [vmem:[%s1578_s9 + $0x10] sm:$0xff]  ;;  %v922_v9 = vld [vmem:[%s1578_s9 + $0x8] sm:$0xff] }
 0x12e   :  { %v352_v12 = vadd.f32 %v351_v8, %v291_v10  ;;  %v945_v8 = vand.u32 4294901760, %v923_v7 }
 0x130   :  { %v390_v14 = vadd.f32 %v389_v13, %v352_v12  ;;  %v974_v10 = vsub.f32 %v923_v7, %v945_v8  ;;  %v947_v12 = vand.u32 4294901760, %v922_v9  ;;  %v921_v13 = vld [vmem:[%s1578_s9] sm:$0xff] }
 0x132   :  { %v421_v16 = vadd.f32 %v420_v15, %v390_v14  ;;  %v975_v14 = vand.u32 4294901760, %v974_v10  ;;  %v980_v15 = vsub.f32 %v922_v9, %v947_v12 }
 0x133   :  { %v465_v17 = vpop.f32.mrf.mxu2 }
 0x134   :  { %v466_v11 = vadd.f32 %v465_v17, %v421_v16  ;;  %v949_v16 = vand.u32 4294901760, %v921_v13  ;;  %v976_v17 = vsub.f32 %v974_v10, %v975_v14 }
 0x136   :  { %v495_v20 = vadd.f32 %v494_v18, %v466_v11  ;;  %v981_v11 = vand.u32 4294901760, %v980_v15  ;;  %v986_v18 = vsub.f32 %v921_v13, %v949_v16 }
 0x138   :  { %v497_v19 = vmax.f32 %v495_v20, 0.0  ;;  %v977_v20 = vand.u32 4294901760, %v976_v17 }
 0x13a   :  { %v510_v21 = vsel %vm508_vm2, %v497_v19, 0  ;;  %v982_v19 = vsub.f32 %v980_v15, %v981_v11 }
 0x13b   :  { %v534_v22 = vand.u32 4294901760, %v510_v21 }
 0x13d   :  { %v535_v23 = vsub.f32 %v510_v21, %v534_v22  ;;  %590 = vmatmul.f32.vlgmr.msrb.gmra.mxu1 %v534_v22  ;;  %v987_v21 = vand.u32 4294901760, %v986_v18 }
 0x13e   :  { %848 = vmatpush.msrb.mxu1 %v747_v28 }
 0x13f   :  { %624 = vmatmul.f32.vlgmr.msrb.gmra.mxu2 %v535_v23  ;;  %v536_v24 = vand.u32 4294901760, %v535_v23 }
 0x140   :  { %850 = vmatpush.msrb.mxu1 %v749_v31  ;;  %877 = vmatpush.msrb.mxu2 %v778_v33 }
 0x141   :  { %653 = vmatmul.f32.vlgmr.msrb.gmra.mxu3 %v536_v24  ;;  %v537_v25 = vsub.f32 %v535_v23, %v536_v24  ;;  %v988_v23 = vsub.f32 %v986_v18, %v987_v21 }
 0x142   :  { %852 = vmatpush.msrb.mxu1 %v751_v35  ;;  %881 = vmatpush.msrb.mxu2 %v784_v38 }
 0x143   :  { %v538_v26 = vand.u32 4294901760, %v537_v25  ;;  %908 = vmatpush.msrb.mxu3 %v747_v28  ;;  %v989_v24 = vand.u32 4294901760, %v988_v23  ;;  %v1296_v25 = vld [vmem:[%s1577_s8] ss:$0 sm:$0xff] }
 0x144   :  { %854 = vmatpush.msrb.mxu1 %v753_v40  ;;  %885 = vmatpush.msrb.mxu2 %v790_v43 }
 0x145   :  { %539 = vmatmul.f32.vlgmr.msrb.gmra.mxu0 %v538_v26  ;;  %719 = vmatmul.f32.vlgmr.msra.gmra.mxu1 %v534_v22 }
 0x146   :  { %819 = vmatpush.msrb.mxu0 %v777_v30  ;;  %889 = vmatpush.msrb.mxu2 %v796_v47  ;;  %v1105_v47 = vld [vmem:[%s1580_s11] sm:$0xff] }
 0x147   :  { %910 = vmatpush.msrb.mxu3 %v749_v31  ;;  %978 = vmatpush.msra.mxu1 %v977_v20  ;;  %v1131_v49 = vand.u32 4294901760, %v1105_v47 }
 0x148   :  { %822 = vmatpush.msrb.mxu0 %v783_v34 }
 0x149   :  { %912 = vmatpush.msrb.mxu3 %v751_v35 }
 0x14a   :  { %825 = vmatpush.msrb.mxu0 %v789_v39 }
 0x14b   :  { %914 = vmatpush.msrb.mxu3 %v753_v40 }
 0x14c   :  { %828 = vmatpush.msrb.mxu0 %v795_v44 }
 0x14d   :  { %692 = vmatmul.f32.vlgmr.msra.gmra.mxu0 %v534_v22  ;;  %v983_v22 = vand.u32 4294901760, %v982_v19 }
 0x14e   :  { %946 = vmatpush.msra.mxu0 %v945_v8 }
 0x14f   :  { %984 = vmatpush.msra.mxu1 %v983_v22 }
 0x150   :  { %948 = vmatpush.msra.mxu0 %v947_v12 }
 0x151   :  { %990 = vmatpush.msra.mxu1 %v989_v24 }
 0x152   :  { %950 = vmatpush.msra.mxu0 %v949_v16 }
 0x1ba   :  { %v591_v52 = vpop.f32.mrf.mxu1 }
 0x1c2   :  { %v540_v53 = vpop.f32.mrf.mxu0  ;;  %v625_v56 = vpop.f32.mrf.mxu2 }
 0x1c3   :  { %v541_v54 = vadd.f32 %v1295_v51, %v540_v53  ;;  %v720_v62 = vpop.f32.mrf.mxu1  ;;  %v1163_v51 = vsub.f32 %v1105_v47, %v1131_v49 }
 0x1c4   :  { %v654_v58 = vpop.f32.mrf.mxu3 }
 0x1c5   :  { %v592_v55 = vadd.f32 %v591_v52, %v541_v54  ;;  %v1159_v52 = vsub.f32 %v1157_v48, %v1158_v50  ;;  %v1164_v53 = vand.u32 4294901760, %v1163_v51 }
 0x1c7   :  { %v626_v57 = vadd.f32 %v625_v56, %v592_v55  ;;  %v1160_v54 = vand.u32 4294901760, %v1159_v52  ;;  %v1165_v55 = vsub.f32 %v1163_v51, %v1164_v53 }
 0x1c9   :  { %v655_v59 = vadd.f32 %v654_v58, %v626_v57  ;;  %v1166_v56 = vand.u32 4294901760, %v1165_v55  ;;  %v1297_v57 = vld [vmem:[%s1579_s10] ss:$0 sm:$0xff] }
 0x1ca   :  { %v693_v60 = vpop.f32.mrf.mxu0 }
 0x1cb   :  { %v694_v61 = vadd.f32 %v693_v60, %v655_v59 }
 0x1cd   :  { %v721_v63 = vadd.f32 %v720_v62, %v694_v61 }
 0x1cf   :  { %v723_v0 = vmax.f32 %v721_v63, 0.0 }
 0x1d1   :  { %v733_v1 = vsel %vm54_vm0, %v723_v0, 0 }
 0x1d2   :  { %v755_v2 = vand.u32 4294901760, %v733_v1 }
 0x1d4   :  { %v756_v3 = vsub.f32 %v733_v1, %v755_v2  ;;  %801 = vmatmul.f32.vlgmr.msra.gmra.mxu3 %v755_v2 }
 0x1d5   :  { %1038 = vmatpush.msra.mxu3 %v945_v8 }
 0x1d6   :  { %831 = vmatmul.f32.vlgmr.msrb.gmra.mxu0 %v756_v3  ;;  %v757_v4 = vand.u32 4294901760, %v756_v3 }
 0x1d7   :  { %1040 = vmatpush.msra.mxu3 %v947_v12  ;;  %1066 = vmatpush.msrb.mxu0 %v975_v14  ;;  %v1298_v14 = vld [vmem:[%s1581_s12] ss:$0 sm:$0xff] }
 0x1d8   :  { %858 = vmatmul.f32.vlgmr.msrb.gmra.mxu1 %v757_v4  ;;  %v758_v5 = vsub.f32 %v756_v3, %v757_v4 }
 0x1d9   :  { %1042 = vmatpush.msra.mxu3 %v949_v16  ;;  %1070 = vmatpush.msrb.mxu0 %v981_v11 }
 0x1da   :  { %v759_v6 = vand.u32 4294901760, %v758_v5  ;;  %1094 = vmatpush.msrb.mxu1 %v945_v8 }
 0x1db   :  { %1074 = vmatpush.msrb.mxu0 %v987_v21 }
 0x1dc   :  { %760 = vmatmul.f32.vlgmr.msra.gmra.mxu2 %v759_v6  ;;  %916 = vmatmul.f32.vlgmr.msrb.gmra.mxu3 %v755_v2 }
 0x1dd   :  { %1011 = vmatpush.msra.mxu2 %v974_v10  ;;  %1096 = vmatpush.msrb.mxu1 %v947_v12 }
 0x1de   :  { %1161 = vmatpush.msrb.mxu3 %v1160_v54 }
 0x1df   :  { %1014 = vmatpush.msra.mxu2 %v980_v15  ;;  %1098 = vmatpush.msrb.mxu1 %v949_v16 }
 0x1e0   :  { %1167 = vmatpush.msrb.mxu3 %v1166_v56 }
 0x1e1   :  { %1017 = vmatpush.msra.mxu2 %v986_v18 }
 0x1e4   :  { %891 = vmatmul.f32.vlgmr.msrb.gmra.mxu2 %v755_v2 }
 0x1e5   :  { %1130 = vmatpush.msrb.mxu2 %v1129_v46 }
 0x1e7   :  { %1132 = vmatpush.msrb.mxu2 %v1131_v49 }
 0x253   :  { %v832_v30 = vpop.f32.mrf.mxu0 }
 0x255   :  { %v859_v32 = vpop.f32.mrf.mxu1 }
 0x257   :  { %v802_v26 = vpop.f32.mrf.mxu3 }
 0x25f   :  { %v761_v27 = vpop.f32.mrf.mxu2  ;;  %v917_v36 = vpop.f32.mrf.mxu3 }
 0x260   :  { %v762_v28 = vadd.f32 %v1296_v25, %v761_v27 }
 0x262   :  { %v803_v29 = vadd.f32 %v802_v26, %v762_v28 }
 0x264   :  { %v833_v31 = vadd.f32 %v832_v30, %v803_v29 }
 0x266   :  { %v860_v33 = vadd.f32 %v859_v32, %v833_v31 }
 0x267   :  { %v892_v34 = vpop.f32.mrf.mxu2 }
 0x268   :  { %v893_v35 = vadd.f32 %v892_v34, %v860_v33 }
 0x26a   :  { %v918_v37 = vadd.f32 %v917_v36, %v893_v35 }
 0x26c   :  { %v920_v38 = vmax.f32 %v918_v37, 0.0 }
 0x26e   :  { %v930_v39 = vsel %vm928_vm3, %v920_v38, 0 }
 0x26f   :  { %v951_v40 = vand.u32 4294901760, %v930_v39 }
 0x271   :  { %v952_v41 = vsub.f32 %v930_v39, %v951_v40  ;;  %992 = vmatmul.f32.vlgmr.msra.gmra.mxu1 %v951_v40 }
 0x272   :  { %1214 = vmatpush.msra.mxu1 %v1129_v46 }
 0x273   :  { %1020 = vmatmul.f32.vlgmr.msra.gmra.mxu2 %v952_v41  ;;  %v953_v42 = vand.u32 4294901760, %v952_v41 }
 0x274   :  { %1216 = vmatpush.msra.mxu1 %v1131_v49  ;;  %1241 = vmatpush.msra.mxu2 %v1158_v50 }
 0x275   :  { %1046 = vmatmul.f32.vlgmr.msra.gmra.mxu3 %v953_v42  ;;  %v954_v43 = vsub.f32 %v952_v41, %v953_v42 }
 0x276   :  { %1245 = vmatpush.msra.mxu2 %v1164_v53  ;;  %1266 = vmatpush.msra.mxu3 %v1129_v46 }
 0x277   :  { %v955_v44 = vand.u32 4294901760, %v954_v43 }
 0x278   :  { %1268 = vmatpush.msra.mxu3 %v1131_v49 }
 0x279   :  { %956 = vmatmul.f32.vlgmr.msra.gmra.mxu0 %v955_v44  ;;  %1100 = vmatmul.f32.vlgmr.msrb.gmra.mxu1 %v951_v40 }
 0x27a   :  { %1189 = vmatpush.msra.mxu0 %v1157_v48 }
 0x27c   :  { %1192 = vmatpush.msra.mxu0 %v1163_v51 }
 0x281   :  { %1076 = vmatmul.f32.vlgmr.msrb.gmra.mxu0 %v951_v40 }
 0x2ee   :  { %v993_v58 = vpop.f32.mrf.mxu1 }
 0x2f6   :  { %v957_v59 = vpop.f32.mrf.mxu0  ;;  %v1021_v62 = vpop.f32.mrf.mxu2 }
 0x2f7   :  { %v958_v60 = vadd.f32 %v1297_v57, %v957_v59  ;;  %v1101_v4 = vpop.f32.mrf.mxu1 }
 0x2f8   :  { %v1047_v0 = vpop.f32.mrf.mxu3 }
 0x2f9   :  { %v994_v61 = vadd.f32 %v993_v58, %v958_v60 }
 0x2fb   :  { %v1022_v63 = vadd.f32 %v1021_v62, %v994_v61 }
 0x2fd   :  { %v1048_v1 = vadd.f32 %v1047_v0, %v1022_v63 }
 0x2fe   :  { %v1077_v2 = vpop.f32.mrf.mxu0 }
 0x2ff   :  { %v1078_v3 = vadd.f32 %v1077_v2, %v1048_v1 }
 0x301   :  { %v1102_v5 = vadd.f32 %v1101_v4, %v1078_v3 }
 0x303   :  { %v1104_v6 = vmax.f32 %v1102_v5, 0.0 }
 0x305   :  { %v1113_v7 = vsel %vm1111_vm4, %v1104_v6, 0 }
 0x306   :  { %v1133_v8 = vand.u32 4294901760, %v1113_v7 }
 0x308   :  { %v1134_v9 = vsub.f32 %v1113_v7, %v1133_v8  ;;  %1169 = vmatmul.f32.vlgmr.msrb.gmra.mxu3 %v1133_v8 }
 0x30a   :  { %1195 = vmatmul.f32.vlgmr.msra.gmra.mxu0 %v1134_v9  ;;  %v1135_v10 = vand.u32 4294901760, %v1134_v9 }
 0x30c   :  { %1220 = vmatmul.f32.vlgmr.msra.gmra.mxu1 %v1135_v10  ;;  %v1136_v12 = vsub.f32 %v1134_v9, %v1135_v10 }
 0x30e   :  { %v1137_v13 = vand.u32 4294901760, %v1136_v12 }
 0x310   :  { %1138 = vmatmul.f32.vlgmr.msrb.gmra.mxu2 %v1137_v13  ;;  %1270 = vmatmul.f32.vlgmr.msra.gmra.mxu3 %v1133_v8 }
 0x318   :  { %1247 = vmatmul.f32.vlgmr.msra.gmra.mxu2 %v1133_v8 }
 0x387   :  { %v1196_v18 = vpop.f32.mrf.mxu0 }
 0x389   :  { %v1221_v19 = vpop.f32.mrf.mxu1 }
 0x38b   :  { %v1170_v15 = vpop.f32.mrf.mxu3 }
 0x393   :  { %v1139_v16 = vpop.f32.mrf.mxu2  ;;  %v1271_v24 = vpop.f32.mrf.mxu3 }
 0x394   :  { %v1140_v17 = vadd.f32 %v1298_v14, %v1139_v16 }
 0x396   :  { %v1171_v11 = vadd.f32 %v1170_v15, %v1140_v17 }
 0x398   :  { %v1197_v20 = vadd.f32 %v1196_v18, %v1171_v11 }
 0x39a   :  { %v1222_v21 = vadd.f32 %v1221_v19, %v1197_v20 }
 0x39b   :  { %v1248_v22 = vpop.f32.mrf.mxu2 }
 0x39c   :  { %v1249_v23 = vadd.f32 %v1248_v22, %v1222_v21 }
 0x39e   :  { %v1272_v25 = vadd.f32 %v1271_v24, %v1249_v23 }
 0x3a0   :  { %1275 = vst.msk [vmem:[#allocation2] sm:$0xff] %vm1274_vm5, %v1272_v25 }
 0x3a1   :  { %1286 = dma.vmem_to_hbm [thread:$0]  %s1282_s5, 128, %s1284_s26, [#allocation3]  }
 0x3a2   :  { %1323 = dma.done.wait [#allocation3], 128  }
 0x3a3   :  { %1324 = vsyncadd [#allocation3], 4294967168 }
 0x3a4   :  { %1291 = vsyncpa [#allocation3], 1 }

</bundles_post_ra>
